<compile_context>
chip_gen: v5e
topology: v5e:2x2
jax: 0.10.0
libtpu: 0.0.40
codegen_flags: <defaults>
</compile_context>

<pallas_src>
import functools

import jax
import jax.numpy as jnp
from jax import lax
from jax.experimental import pallas as pl
from jax.experimental.pallas import tpu as pltpu


_LANE = 128      # lane width
_SUBLANE = 8     # f32 sublane height


def _round_up(x, m):
    return (x + m - 1) // m * m


def _cdiv(a, b):
    return (a + b - 1) // b


def _vmem_capacity_bytes():
    """Generation-aware VMEM capacity (128 MiB v5e/v6e, 64 MiB v7x)."""
    try:
        info = pltpu.get_tpu_info()
        cap = int(getattr(info, "vmem_capacity_bytes", 0) or 0)
        if cap > 0:
            return cap
    except Exception:
        pass
    return 64 << 20   # conservative fallback (v7x physical VMEM)


def _step_bytes(tq, h, kp_pad, dv_pad):
    """Per-grid-step VMEM estimate: double-buffered blocks + f32 intermediates."""
    blocks = tq * h + h * kp_pad + kp_pad * dv_pad + tq * dv_pad + tq * kp_pad
    interm = 5 * tq * kp_pad + tq * dv_pad        # scores / e / mask temps / out
    return 4 * (2 * blocks + interm)


def _pick_tq(b, q, h, kp_pad, dv_pad, budget):
    """Q-tile: as large as the VMEM budget allows, but keep >= 4 grid steps."""
    tq = min(_round_up(q, _SUBLANE), 512)
    while tq > _SUBLANE and _step_bytes(tq, h, kp_pad, dv_pad) > budget:
        new_tq = max(_SUBLANE, ((tq // 2) // _SUBLANE) * _SUBLANE)
        if new_tq == tq:
            break
        tq = new_tq
    # Enough steps for software pipelining and both v7x TensorCores.
    while b * _cdiv(q, tq) < 4 and tq > _SUBLANE:
        new_tq = max(_SUBLANE, ((tq // 2) // _SUBLANE) * _SUBLANE)
        if new_tq == tq:
            break
        tq = new_tq
    return tq


def _additive_attn_kernel(vl_ref,                 # SMEM prefetch: (B,) int32
                          qp_ref,                 # (TQ, H)   f32  (queries @ W_q)
                          kpt_ref,                # (H,  Kp)  f32  (keys @ W_k)^T
                          v_ref,                  # (Kp, Dvp) f32
                          wv_ref,                 # (H,) f32 in SMEM
                          out_ref,                # (TQ, Dvp)
                          attn_ref,               # (TQ, Kp)
                          *, num_hiddens, k_actual):
    b = pl.program_id(0)
    vl = vl_ref[b]                                # per-batch valid length (scalar)

    qp = qp_ref[...]                              # (TQ, H)
    kpt = kpt_ref[...]                            # (H, Kp)
    tq = qp.shape[0]
    kp_pad = kpt.shape[1]

    # scores[q, k] = sum_h wv[h] * tanh(qp[q, h] + kpt[h, k])
    # Lane-dense K: each h is a full (TQ, Kp) tanh with all 128 lanes active,
    # accumulated with VALU FMAs (no (TQ, K, H) intermediate, no XLU reduce).
    scores = jnp.zeros((tq, kp_pad), jnp.float32)
    for h in range(num_hiddens):                  # static unroll; H is small
        q_col = qp[:, h:h + 1]                    # (TQ, 1)  -> lane broadcast
        k_row = kpt[h:h + 1, :]                   # (1, Kp)  -> sublane broadcast
        scores = scores + wv_ref[h] * jnp.tanh(q_col + k_row)

    # Masked softmax over the lane (key) axis.
    col = lax.broadcasted_iota(jnp.int32, scores.shape, 1)
    scores = jnp.where(col < vl, scores, jnp.float32(-1e6))      # reference mask value
    if k_actual < kp_pad:
        # Padded key columns are excluded regardless of valid_len so that a
        # valid_len == 0 row stays uniform over the *real* K columns.
        scores = jnp.where(col < k_actual, scores, jnp.float32(-1e30))

    m = jnp.max(scores, axis=-1, keepdims=True)
    e = jnp.exp(scores - m)
    denom = jnp.sum(e, axis=-1, keepdims=True)
    r = pl.reciprocal(denom, approx=True)
    r = r * (2.0 - denom * r)                     # one Newton step (~1e-7 rel err)
    attn = e * r

    attn_ref[...] = attn.astype(attn_ref.dtype)
    out_ref[...] = jnp.dot(attn.astype(v_ref.dtype), v_ref[...],
                           preferred_element_type=jnp.float32).astype(out_ref.dtype)


@jax.jit
def additive_attention(queries, keys, values, valid_lens, wq, wk, wv):
    B, Q, Dq = queries.shape
    _, K, Dk = keys.shape
    Dv = values.shape[-1]
    H = wq.shape[-1]

    kp_pad = _round_up(K, _LANE)      # lane-dense key axis
    dv_pad = _round_up(Dv, _LANE)     # lane-dense value axis

    capacity = _vmem_capacity_bytes()
    tq = _pick_tq(B, Q, H, kp_pad, dv_pad, budget=int(capacity * 0.7))
    q_pad = _round_up(Q, tq)
    vmem_limit = int(min(capacity,
                         max(32 << 20,
                             _step_bytes(tq, H, kp_pad, dv_pad) + (8 << 20))))

    # Whole-batch projections as two large MXU-friendly matmuls (once per call,
    # not per Q-block); keys come out directly in the lane-dense (H, K) layout.
    qp = jnp.einsum('bqd,dh->bqh', queries.astype(jnp.float32), wq)   # (B, Q, H)
    kpt = jnp.einsum('bkd,dh->bhk', keys.astype(jnp.float32), wk)     # (B, H, K)

    qp_p = jnp.pad(qp, ((0, 0), (0, q_pad - Q), (0, 0))) if q_pad != Q else qp
    kpt_p = jnp.pad(kpt, ((0, 0), (0, 0), (0, kp_pad - K))) if kp_pad != K else kpt
    v_p = (jnp.pad(values, ((0, 0), (0, kp_pad - K), (0, dv_pad - Dv)))
           if (kp_pad != K or dv_pad != Dv) else values).astype(jnp.float32)
    wv_vec = wv.reshape(H).astype(jnp.float32)

    grid = (B, q_pad // tq)
    kernel = functools.partial(_additive_attn_kernel, num_hiddens=H, k_actual=K)

    grid_spec = pltpu.PrefetchScalarGridSpec(
        num_scalar_prefetch=1,
        grid=grid,
        in_specs=[
            pl.BlockSpec((None, tq, H), lambda b, qi, vl: (b, qi, 0)),
            pl.BlockSpec((None, H, kp_pad), lambda b, qi, vl: (b, 0, 0)),
            pl.BlockSpec((None, kp_pad, dv_pad), lambda b, qi, vl: (b, 0, 0)),
            pl.BlockSpec(memory_space=pltpu.MemorySpace.SMEM),      # w_v scalars
        ],
        out_specs=(
            pl.BlockSpec((None, tq, dv_pad), lambda b, qi, vl: (b, qi, 0)),
            pl.BlockSpec((None, tq, kp_pad), lambda b, qi, vl: (b, qi, 0)),
        ),
    )

    out_p, attn_p = pl.pallas_call(
        kernel,
        grid_spec=grid_spec,
        out_shape=(
            jax.ShapeDtypeStruct((B, q_pad, dv_pad), jnp.float32),
            jax.ShapeDtypeStruct((B, q_pad, kp_pad), jnp.float32),
        ),
        compiler_params=pltpu.CompilerParams(
            dimension_semantics=("parallel", "parallel"),
            vmem_limit_bytes=vmem_limit),
    )(valid_lens.astype(jnp.int32), qp_p, kpt_p, v_p, wv_vec)

    return out_p[:, :Q, :Dv], attn_p[:, :Q, :K]


def _reference(queries, keys, values, valid_lens, wq, wk, wv):
    qp = queries @ wq                      # (B,Q,H)
    kp = keys @ wk                         # (B,K,H)
    feats = jnp.tanh(qp[:, :, None, :] + kp[:, None, :, :])    # (B,Q,K,H)
    scores = jnp.squeeze(feats @ wv, -1)   # (B,Q,K)
    K = scores.shape[-1]
    mask = jnp.arange(K)[None, None, :] < valid_lens[:, None, None]
    scores = jnp.where(mask, scores, -1e6)
    attn = jax.nn.softmax(scores, axis=-1)
    return jnp.einsum('bqk,bkd->bqd', attn, values), attn


if __name__ == "__main__":
    # Small deterministic problem: B=3, Q=8 queries, K=16 keys,
    # query_size=24, key_size=20, value dim=16, num_hiddens=32.
    B, Q, K = 3, 8, 16
    Dq, Dk, Dv, H = 24, 20, 16, 32

    key = jax.random.PRNGKey(0)
    kq, kk, kv, kwq, kwk, kwv = jax.random.split(key, 6)

    queries = jax.random.normal(kq, (B, Q, Dq), dtype=jnp.float32)
    keys = jax.random.normal(kk, (B, K, Dk), dtype=jnp.float32)
    values = jax.random.normal(kv, (B, K, Dv), dtype=jnp.float32)
    # Includes a valid_len == 0 row to exercise the uniform-softmax edge case.
    valid_lens = jnp.array([3, 11, 0], dtype=jnp.int32)

    # Deterministic parameter init (nn.Linear-style uniform fan-in bound),
    # stored pre-transposed so x @ W matches PyTorch's x @ W_linear.T.
    wq = jax.random.uniform(kwq, (Dq, H), jnp.float32,
                            -1.0 / Dq ** 0.5, 1.0 / Dq ** 0.5)
    wk = jax.random.uniform(kwk, (Dk, H), jnp.float32,
                            -1.0 / Dk ** 0.5, 1.0 / Dk ** 0.5)
    wv = jax.random.uniform(kwv, (H, 1), jnp.float32,
                            -1.0 / H ** 0.5, 1.0 / H ** 0.5)

    out, attn = additive_attention(queries, keys, values, valid_lens, wq, wk, wv)
    jax.block_until_ready((out, attn))

    ref_out, ref_attn = _reference(queries, keys, values, valid_lens, wq, wk, wv)
    assert out.shape == ref_out.shape and attn.shape == ref_attn.shape
    assert jnp.allclose(out, ref_out, atol=1e-4, rtol=1e-4), "output mismatch"
    assert jnp.allclose(attn, ref_attn, atol=1e-4, rtol=1e-4), "attn mismatch"

    print("KERNEL_OK")
</pallas_src>

<mosaic_0001>
module attributes {stable_mosaic.version = 11 : i64} {
  func.func @_additive_attn_kernel(%arg0: i32, %arg1: i32, %arg2: memref<3xi32, #tpu.memory_space<smem>>, %arg3: memref<1x8x32xf32, #tpu.memory_space<vmem>>, %arg4: memref<1x32x128xf32, #tpu.memory_space<vmem>>, %arg5: memref<1x128x128xf32, #tpu.memory_space<vmem>>, %arg6: memref<32xf32, #tpu.memory_space<smem>>, %arg7: memref<1x8x128xf32, #tpu.memory_space<vmem>>, %arg8: memref<1x8x128xf32, #tpu.memory_space<vmem>>) attributes {dimension_semantics = [#tpu.dimension_semantics<parallel>, #tpu.dimension_semantics<parallel>], iteration_bounds = array<i64: 3, 1>, scalar_prefetch = 1 : i64, scratch_operands = 0 : i64, tpu.core_type = #tpu.core_type<tc>, window_params = [{transform_indices = @transform_0, window_bounds = array<i64: 1, 8, 32>}, {transform_indices = @transform_1, window_bounds = array<i64: 1, 32, 128>}, {transform_indices = @transform_2, window_bounds = array<i64: 1, 128, 128>}, {transform_indices = @transform_3, window_bounds = array<i64: 32>}, {transform_indices = @transform_4, window_bounds = array<i64: 1, 8, 128>}, {transform_indices = @transform_5, window_bounds = array<i64: 1, 8, 128>}]} {
    %0 = arith.index_cast %arg0 : i32 to index
    %1 = memref.load %arg2[%0] : memref<3xi32, #tpu.memory_space<smem>>
    %c0 = arith.constant 0 : index
    %c0_0 = arith.constant 0 : index
    %c0_1 = arith.constant 0 : index
    %2 = vector.load %arg3[%c0, %c0_0, %c0_1] : memref<1x8x32xf32, #tpu.memory_space<vmem>>, vector<1x8x32xf32>
    %3 = vector.shape_cast %2 : vector<1x8x32xf32> to vector<8x32xf32>
    %c0_2 = arith.constant 0 : index
    %c0_3 = arith.constant 0 : index
    %c0_4 = arith.constant 0 : index
    %4 = vector.load %arg4[%c0_2, %c0_3, %c0_4] : memref<1x32x128xf32, #tpu.memory_space<vmem>>, vector<1x32x128xf32>
    %5 = vector.shape_cast %4 : vector<1x32x128xf32> to vector<32x128xf32>
    %cst = arith.constant 0.000000e+00 : f32
    %6 = vector.broadcast %cst : f32 to vector<8x128xf32>
    %7 = vector.extract_strided_slice %3 {offsets = [0, 0], sizes = [8, 1], strides = [1, 1]} : vector<8x32xf32> to vector<8x1xf32>
    %8 = vector.extract_strided_slice %5 {offsets = [0, 0], sizes = [1, 128], strides = [1, 1]} : vector<32x128xf32> to vector<1x128xf32>
    %c0_5 = arith.constant 0 : index
    %9 = memref.load %arg6[%c0_5] : memref<32xf32, #tpu.memory_space<smem>>
    %10 = vector.broadcast %7 : vector<8x1xf32> to vector<8x128xf32>
    %11 = vector.broadcast %8 : vector<1x128xf32> to vector<8x128xf32>
    %12 = arith.addf %10, %11 : vector<8x128xf32>
    %13 = math.tanh %12 : vector<8x128xf32>
    %14 = vector.broadcast %9 : f32 to vector<8x128xf32>
    %15 = arith.mulf %14, %13 : vector<8x128xf32>
    %16 = arith.addf %6, %15 : vector<8x128xf32>
    %17 = vector.extract_strided_slice %3 {offsets = [0, 1], sizes = [8, 1], strides = [1, 1]} : vector<8x32xf32> to vector<8x1xf32>
    %18 = vector.extract_strided_slice %5 {offsets = [1, 0], sizes = [1, 128], strides = [1, 1]} : vector<32x128xf32> to vector<1x128xf32>
    %c1 = arith.constant 1 : index
    %19 = memref.load %arg6[%c1] : memref<32xf32, #tpu.memory_space<smem>>
    %20 = vector.broadcast %17 : vector<8x1xf32> to vector<8x128xf32>
    %21 = vector.broadcast %18 : vector<1x128xf32> to vector<8x128xf32>
    %22 = arith.addf %20, %21 : vector<8x128xf32>
    %23 = math.tanh %22 : vector<8x128xf32>
    %24 = vector.broadcast %19 : f32 to vector<8x128xf32>
    %25 = arith.mulf %24, %23 : vector<8x128xf32>
    %26 = arith.addf %16, %25 : vector<8x128xf32>
    %27 = vector.extract_strided_slice %3 {offsets = [0, 2], sizes = [8, 1], strides = [1, 1]} : vector<8x32xf32> to vector<8x1xf32>
    %28 = vector.extract_strided_slice %5 {offsets = [2, 0], sizes = [1, 128], strides = [1, 1]} : vector<32x128xf32> to vector<1x128xf32>
    %c2 = arith.constant 2 : index
    %29 = memref.load %arg6[%c2] : memref<32xf32, #tpu.memory_space<smem>>
    %30 = vector.broadcast %27 : vector<8x1xf32> to vector<8x128xf32>
    %31 = vector.broadcast %28 : vector<1x128xf32> to vector<8x128xf32>
    %32 = arith.addf %30, %31 : vector<8x128xf32>
    %33 = math.tanh %32 : vector<8x128xf32>
    %34 = vector.broadcast %29 : f32 to vector<8x128xf32>
    %35 = arith.mulf %34, %33 : vector<8x128xf32>
    %36 = arith.addf %26, %35 : vector<8x128xf32>
    %37 = vector.extract_strided_slice %3 {offsets = [0, 3], sizes = [8, 1], strides = [1, 1]} : vector<8x32xf32> to vector<8x1xf32>
    %38 = vector.extract_strided_slice %5 {offsets = [3, 0], sizes = [1, 128], strides = [1, 1]} : vector<32x128xf32> to vector<1x128xf32>
    %c3 = arith.constant 3 : index
    %39 = memref.load %arg6[%c3] : memref<32xf32, #tpu.memory_space<smem>>
    %40 = vector.broadcast %37 : vector<8x1xf32> to vector<8x128xf32>
    %41 = vector.broadcast %38 : vector<1x128xf32> to vector<8x128xf32>
    %42 = arith.addf %40, %41 : vector<8x128xf32>
    %43 = math.tanh %42 : vector<8x128xf32>
    %44 = vector.broadcast %39 : f32 to vector<8x128xf32>
    %45 = arith.mulf %44, %43 : vector<8x128xf32>
    %46 = arith.addf %36, %45 : vector<8x128xf32>
    %47 = vector.extract_strided_slice %3 {offsets = [0, 4], sizes = [8, 1], strides = [1, 1]} : vector<8x32xf32> to vector<8x1xf32>
    %48 = vector.extract_strided_slice %5 {offsets = [4, 0], sizes = [1, 128], strides = [1, 1]} : vector<32x128xf32> to vector<1x128xf32>
    %c4 = arith.constant 4 : index
    %49 = memref.load %arg6[%c4] : memref<32xf32, #tpu.memory_space<smem>>
    %50 = vector.broadcast %47 : vector<8x1xf32> to vector<8x128xf32>
    %51 = vector.broadcast %48 : vector<1x128xf32> to vector<8x128xf32>
    %52 = arith.addf %50, %51 : vector<8x128xf32>
    %53 = math.tanh %52 : vector<8x128xf32>
    %54 = vector.broadcast %49 : f32 to vector<8x128xf32>
    %55 = arith.mulf %54, %53 : vector<8x128xf32>
    %56 = arith.addf %46, %55 : vector<8x128xf32>
    %57 = vector.extract_strided_slice %3 {offsets = [0, 5], sizes = [8, 1], strides = [1, 1]} : vector<8x32xf32> to vector<8x1xf32>
    %58 = vector.extract_strided_slice %5 {offsets = [5, 0], sizes = [1, 128], strides = [1, 1]} : vector<32x128xf32> to vector<1x128xf32>
    %c5 = arith.constant 5 : index
    %59 = memref.load %arg6[%c5] : memref<32xf32, #tpu.memory_space<smem>>
    %60 = vector.broadcast %57 : vector<8x1xf32> to vector<8x128xf32>
    %61 = vector.broadcast %58 : vector<1x128xf32> to vector<8x128xf32>
    %62 = arith.addf %60, %61 : vector<8x128xf32>
    %63 = math.tanh %62 : vector<8x128xf32>
    %64 = vector.broadcast %59 : f32 to vector<8x128xf32>
    %65 = arith.mulf %64, %63 : vector<8x128xf32>
    %66 = arith.addf %56, %65 : vector<8x128xf32>
    %67 = vector.extract_strided_slice %3 {offsets = [0, 6], sizes = [8, 1], strides = [1, 1]} : vector<8x32xf32> to vector<8x1xf32>
    %68 = vector.extract_strided_slice %5 {offsets = [6, 0], sizes = [1, 128], strides = [1, 1]} : vector<32x128xf32> to vector<1x128xf32>
    %c6 = arith.constant 6 : index
    %69 = memref.load %arg6[%c6] : memref<32xf32, #tpu.memory_space<smem>>
    %70 = vector.broadcast %67 : vector<8x1xf32> to vector<8x128xf32>
    %71 = vector.broadcast %68 : vector<1x128xf32> to vector<8x128xf32>
    %72 = arith.addf %70, %71 : vector<8x128xf32>
    %73 = math.tanh %72 : vector<8x128xf32>
    %74 = vector.broadcast %69 : f32 to vector<8x128xf32>
    %75 = arith.mulf %74, %73 : vector<8x128xf32>
    %76 = arith.addf %66, %75 : vector<8x128xf32>
    %77 = vector.extract_strided_slice %3 {offsets = [0, 7], sizes = [8, 1], strides = [1, 1]} : vector<8x32xf32> to vector<8x1xf32>
    %78 = vector.extract_strided_slice %5 {offsets = [7, 0], sizes = [1, 128], strides = [1, 1]} : vector<32x128xf32> to vector<1x128xf32>
    %c7 = arith.constant 7 : index
    %79 = memref.load %arg6[%c7] : memref<32xf32, #tpu.memory_space<smem>>
    %80 = vector.broadcast %77 : vector<8x1xf32> to vector<8x128xf32>
    %81 = vector.broadcast %78 : vector<1x128xf32> to vector<8x128xf32>
    %82 = arith.addf %80, %81 : vector<8x128xf32>
    %83 = math.tanh %82 : vector<8x128xf32>
    %84 = vector.broadcast %79 : f32 to vector<8x128xf32>
    %85 = arith.mulf %84, %83 : vector<8x128xf32>
    %86 = arith.addf %76, %85 : vector<8x128xf32>
    %87 = vector.extract_strided_slice %3 {offsets = [0, 8], sizes = [8, 1], strides = [1, 1]} : vector<8x32xf32> to vector<8x1xf32>
    %88 = vector.extract_strided_slice %5 {offsets = [8, 0], sizes = [1, 128], strides = [1, 1]} : vector<32x128xf32> to vector<1x128xf32>
    %c8 = arith.constant 8 : index
    %89 = memref.load %arg6[%c8] : memref<32xf32, #tpu.memory_space<smem>>
    %90 = vector.broadcast %87 : vector<8x1xf32> to vector<8x128xf32>
    %91 = vector.broadcast %88 : vector<1x128xf32> to vector<8x128xf32>
    %92 = arith.addf %90, %91 : vector<8x128xf32>
    %93 = math.tanh %92 : vector<8x128xf32>
    %94 = vector.broadcast %89 : f32 to vector<8x128xf32>
    %95 = arith.mulf %94, %93 : vector<8x128xf32>
    %96 = arith.addf %86, %95 : vector<8x128xf32>
    %97 = vector.extract_strided_slice %3 {offsets = [0, 9], sizes = [8, 1], strides = [1, 1]} : vector<8x32xf32> to vector<8x1xf32>
    %98 = vector.extract_strided_slice %5 {offsets = [9, 0], sizes = [1, 128], strides = [1, 1]} : vector<32x128xf32> to vector<1x128xf32>
    %c9 = arith.constant 9 : index
    %99 = memref.load %arg6[%c9] : memref<32xf32, #tpu.memory_space<smem>>
    %100 = vector.broadcast %97 : vector<8x1xf32> to vector<8x128xf32>
    %101 = vector.broadcast %98 : vector<1x128xf32> to vector<8x128xf32>
    %102 = arith.addf %100, %101 : vector<8x128xf32>
    %103 = math.tanh %102 : vector<8x128xf32>
    %104 = vector.broadcast %99 : f32 to vector<8x128xf32>
    %105 = arith.mulf %104, %103 : vector<8x128xf32>
    %106 = arith.addf %96, %105 : vector<8x128xf32>
    %107 = vector.extract_strided_slice %3 {offsets = [0, 10], sizes = [8, 1], strides = [1, 1]} : vector<8x32xf32> to vector<8x1xf32>
    %108 = vector.extract_strided_slice %5 {offsets = [10, 0], sizes = [1, 128], strides = [1, 1]} : vector<32x128xf32> to vector<1x128xf32>
    %c10 = arith.constant 10 : index
    %109 = memref.load %arg6[%c10] : memref<32xf32, #tpu.memory_space<smem>>
    %110 = vector.broadcast %107 : vector<8x1xf32> to vector<8x128xf32>
    %111 = vector.broadcast %108 : vector<1x128xf32> to vector<8x128xf32>
    %112 = arith.addf %110, %111 : vector<8x128xf32>
    %113 = math.tanh %112 : vector<8x128xf32>
    %114 = vector.broadcast %109 : f32 to vector<8x128xf32>
    %115 = arith.mulf %114, %113 : vector<8x128xf32>
    %116 = arith.addf %106, %115 : vector<8x128xf32>
    %117 = vector.extract_strided_slice %3 {offsets = [0, 11], sizes = [8, 1], strides = [1, 1]} : vector<8x32xf32> to vector<8x1xf32>
    %118 = vector.extract_strided_slice %5 {offsets = [11, 0], sizes = [1, 128], strides = [1, 1]} : vector<32x128xf32> to vector<1x128xf32>
    %c11 = arith.constant 11 : index
    %119 = memref.load %arg6[%c11] : memref<32xf32, #tpu.memory_space<smem>>
    %120 = vector.broadcast %117 : vector<8x1xf32> to vector<8x128xf32>
    %121 = vector.broadcast %118 : vector<1x128xf32> to vector<8x128xf32>
    %122 = arith.addf %120, %121 : vector<8x128xf32>
    %123 = math.tanh %122 : vector<8x128xf32>
    %124 = vector.broadcast %119 : f32 to vector<8x128xf32>
    %125 = arith.mulf %124, %123 : vector<8x128xf32>
    %126 = arith.addf %116, %125 : vector<8x128xf32>
    %127 = vector.extract_strided_slice %3 {offsets = [0, 12], sizes = [8, 1], strides = [1, 1]} : vector<8x32xf32> to vector<8x1xf32>
    %128 = vector.extract_strided_slice %5 {offsets = [12, 0], sizes = [1, 128], strides = [1, 1]} : vector<32x128xf32> to vector<1x128xf32>
    %c12 = arith.constant 12 : index
    %129 = memref.load %arg6[%c12] : memref<32xf32, #tpu.memory_space<smem>>
    %130 = vector.broadcast %127 : vector<8x1xf32> to vector<8x128xf32>
    %131 = vector.broadcast %128 : vector<1x128xf32> to vector<8x128xf32>
    %132 = arith.addf %130, %131 : vector<8x128xf32>
    %133 = math.tanh %132 : vector<8x128xf32>
    %134 = vector.broadcast %129 : f32 to vector<8x128xf32>
    %135 = arith.mulf %134, %133 : vector<8x128xf32>
    %136 = arith.addf %126, %135 : vector<8x128xf32>
    %137 = vector.extract_strided_slice %3 {offsets = [0, 13], sizes = [8, 1], strides = [1, 1]} : vector<8x32xf32> to vector<8x1xf32>
    %138 = vector.extract_strided_slice %5 {offsets = [13, 0], sizes = [1, 128], strides = [1, 1]} : vector<32x128xf32> to vector<1x128xf32>
    %c13 = arith.constant 13 : index
    %139 = memref.load %arg6[%c13] : memref<32xf32, #tpu.memory_space<smem>>
    %140 = vector.broadcast %137 : vector<8x1xf32> to vector<8x128xf32>
    %141 = vector.broadcast %138 : vector<1x128xf32> to vector<8x128xf32>
    %142 = arith.addf %140, %141 : vector<8x128xf32>
    %143 = math.tanh %142 : vector<8x128xf32>
    %144 = vector.broadcast %139 : f32 to vector<8x128xf32>
    %145 = arith.mulf %144, %143 : vector<8x128xf32>
    %146 = arith.addf %136, %145 : vector<8x128xf32>
    %147 = vector.extract_strided_slice %3 {offsets = [0, 14], sizes = [8, 1], strides = [1, 1]} : vector<8x32xf32> to vector<8x1xf32>
    %148 = vector.extract_strided_slice %5 {offsets = [14, 0], sizes = [1, 128], strides = [1, 1]} : vector<32x128xf32> to vector<1x128xf32>
    %c14 = arith.constant 14 : index
    %149 = memref.load %arg6[%c14] : memref<32xf32, #tpu.memory_space<smem>>
    %150 = vector.broadcast %147 : vector<8x1xf32> to vector<8x128xf32>
    %151 = vector.broadcast %148 : vector<1x128xf32> to vector<8x128xf32>
    %152 = arith.addf %150, %151 : vector<8x128xf32>
    %153 = math.tanh %152 : vector<8x128xf32>
    %154 = vector.broadcast %149 : f32 to vector<8x128xf32>
    %155 = arith.mulf %154, %153 : vector<8x128xf32>
    %156 = arith.addf %146, %155 : vector<8x128xf32>
    %157 = vector.extract_strided_slice %3 {offsets = [0, 15], sizes = [8, 1], strides = [1, 1]} : vector<8x32xf32> to vector<8x1xf32>
    %158 = vector.extract_strided_slice %5 {offsets = [15, 0], sizes = [1, 128], strides = [1, 1]} : vector<32x128xf32> to vector<1x128xf32>
    %c15 = arith.constant 15 : index
    %159 = memref.load %arg6[%c15] : memref<32xf32, #tpu.memory_space<smem>>
    %160 = vector.broadcast %157 : vector<8x1xf32> to vector<8x128xf32>
    %161 = vector.broadcast %158 : vector<1x128xf32> to vector<8x128xf32>
    %162 = arith.addf %160, %161 : vector<8x128xf32>
    %163 = math.tanh %162 : vector<8x128xf32>
    %164 = vector.broadcast %159 : f32 to vector<8x128xf32>
    %165 = arith.mulf %164, %163 : vector<8x128xf32>
    %166 = arith.addf %156, %165 : vector<8x128xf32>
    %167 = vector.extract_strided_slice %3 {offsets = [0, 16], sizes = [8, 1], strides = [1, 1]} : vector<8x32xf32> to vector<8x1xf32>
    %168 = vector.extract_strided_slice %5 {offsets = [16, 0], sizes = [1, 128], strides = [1, 1]} : vector<32x128xf32> to vector<1x128xf32>
    %c16 = arith.constant 16 : index
    %169 = memref.load %arg6[%c16] : memref<32xf32, #tpu.memory_space<smem>>
    %170 = vector.broadcast %167 : vector<8x1xf32> to vector<8x128xf32>
    %171 = vector.broadcast %168 : vector<1x128xf32> to vector<8x128xf32>
    %172 = arith.addf %170, %171 : vector<8x128xf32>
    %173 = math.tanh %172 : vector<8x128xf32>
    %174 = vector.broadcast %169 : f32 to vector<8x128xf32>
    %175 = arith.mulf %174, %173 : vector<8x128xf32>
    %176 = arith.addf %166, %175 : vector<8x128xf32>
    %177 = vector.extract_strided_slice %3 {offsets = [0, 17], sizes = [8, 1], strides = [1, 1]} : vector<8x32xf32> to vector<8x1xf32>
    %178 = vector.extract_strided_slice %5 {offsets = [17, 0], sizes = [1, 128], strides = [1, 1]} : vector<32x128xf32> to vector<1x128xf32>
    %c17 = arith.constant 17 : index
    %179 = memref.load %arg6[%c17] : memref<32xf32, #tpu.memory_space<smem>>
    %180 = vector.broadcast %177 : vector<8x1xf32> to vector<8x128xf32>
    %181 = vector.broadcast %178 : vector<1x128xf32> to vector<8x128xf32>
    %182 = arith.addf %180, %181 : vector<8x128xf32>
    %183 = math.tanh %182 : vector<8x128xf32>
    %184 = vector.broadcast %179 : f32 to vector<8x128xf32>
    %185 = arith.mulf %184, %183 : vector<8x128xf32>
    %186 = arith.addf %176, %185 : vector<8x128xf32>
    %187 = vector.extract_strided_slice %3 {offsets = [0, 18], sizes = [8, 1], strides = [1, 1]} : vector<8x32xf32> to vector<8x1xf32>
    %188 = vector.extract_strided_slice %5 {offsets = [18, 0], sizes = [1, 128], strides = [1, 1]} : vector<32x128xf32> to vector<1x128xf32>
    %c18 = arith.constant 18 : index
    %189 = memref.load %arg6[%c18] : memref<32xf32, #tpu.memory_space<smem>>
    %190 = vector.broadcast %187 : vector<8x1xf32> to vector<8x128xf32>
    %191 = vector.broadcast %188 : vector<1x128xf32> to vector<8x128xf32>
    %192 = arith.addf %190, %191 : vector<8x128xf32>
    %193 = math.tanh %192 : vector<8x128xf32>
    %194 = vector.broadcast %189 : f32 to vector<8x128xf32>
    %195 = arith.mulf %194, %193 : vector<8x128xf32>
    %196 = arith.addf %186, %195 : vector<8x128xf32>
    %197 = vector.extract_strided_slice %3 {offsets = [0, 19], sizes = [8, 1], strides = [1, 1]} : vector<8x32xf32> to vector<8x1xf32>
    %198 = vector.extract_strided_slice %5 {offsets = [19, 0], sizes = [1, 128], strides = [1, 1]} : vector<32x128xf32> to vector<1x128xf32>
    %c19 = arith.constant 19 : index
    %199 = memref.load %arg6[%c19] : memref<32xf32, #tpu.memory_space<smem>>
    %200 = vector.broadcast %197 : vector<8x1xf32> to vector<8x128xf32>
    %201 = vector.broadcast %198 : vector<1x128xf32> to vector<8x128xf32>
    %202 = arith.addf %200, %201 : vector<8x128xf32>
    %203 = math.tanh %202 : vector<8x128xf32>
    %204 = vector.broadcast %199 : f32 to vector<8x128xf32>
    %205 = arith.mulf %204, %203 : vector<8x128xf32>
    %206 = arith.addf %196, %205 : vector<8x128xf32>
    %207 = vector.extract_strided_slice %3 {offsets = [0, 20], sizes = [8, 1], strides = [1, 1]} : vector<8x32xf32> to vector<8x1xf32>
    %208 = vector.extract_strided_slice %5 {offsets = [20, 0], sizes = [1, 128], strides = [1, 1]} : vector<32x128xf32> to vector<1x128xf32>
    %c20 = arith.constant 20 : index
    %209 = memref.load %arg6[%c20] : memref<32xf32, #tpu.memory_space<smem>>
    %210 = vector.broadcast %207 : vector<8x1xf32> to vector<8x128xf32>
    %211 = vector.broadcast %208 : vector<1x128xf32> to vector<8x128xf32>
    %212 = arith.addf %210, %211 : vector<8x128xf32>
    %213 = math.tanh %212 : vector<8x128xf32>
    %214 = vector.broadcast %209 : f32 to vector<8x128xf32>
    %215 = arith.mulf %214, %213 : vector<8x128xf32>
    %216 = arith.addf %206, %215 : vector<8x128xf32>
    %217 = vector.extract_strided_slice %3 {offsets = [0, 21], sizes = [8, 1], strides = [1, 1]} : vector<8x32xf32> to vector<8x1xf32>
    %218 = vector.extract_strided_slice %5 {offsets = [21, 0], sizes = [1, 128], strides = [1, 1]} : vector<32x128xf32> to vector<1x128xf32>
    %c21 = arith.constant 21 : index
    %219 = memref.load %arg6[%c21] : memref<32xf32, #tpu.memory_space<smem>>
    %220 = vector.broadcast %217 : vector<8x1xf32> to vector<8x128xf32>
    %221 = vector.broadcast %218 : vector<1x128xf32> to vector<8x128xf32>
    %222 = arith.addf %220, %221 : vector<8x128xf32>
    %223 = math.tanh %222 : vector<8x128xf32>
    %224 = vector.broadcast %219 : f32 to vector<8x128xf32>
    %225 = arith.mulf %224, %223 : vector<8x128xf32>
    %226 = arith.addf %216, %225 : vector<8x128xf32>
    %227 = vector.extract_strided_slice %3 {offsets = [0, 22], sizes = [8, 1], strides = [1, 1]} : vector<8x32xf32> to vector<8x1xf32>
    %228 = vector.extract_strided_slice %5 {offsets = [22, 0], sizes = [1, 128], strides = [1, 1]} : vector<32x128xf32> to vector<1x128xf32>
    %c22 = arith.constant 22 : index
    %229 = memref.load %arg6[%c22] : memref<32xf32, #tpu.memory_space<smem>>
    %230 = vector.broadcast %227 : vector<8x1xf32> to vector<8x128xf32>
    %231 = vector.broadcast %228 : vector<1x128xf32> to vector<8x128xf32>
    %232 = arith.addf %230, %231 : vector<8x128xf32>
    %233 = math.tanh %232 : vector<8x128xf32>
    %234 = vector.broadcast %229 : f32 to vector<8x128xf32>
    %235 = arith.mulf %234, %233 : vector<8x128xf32>
    %236 = arith.addf %226, %235 : vector<8x128xf32>
    %237 = vector.extract_strided_slice %3 {offsets = [0, 23], sizes = [8, 1], strides = [1, 1]} : vector<8x32xf32> to vector<8x1xf32>
    %238 = vector.extract_strided_slice %5 {offsets = [23, 0], sizes = [1, 128], strides = [1, 1]} : vector<32x128xf32> to vector<1x128xf32>
    %c23 = arith.constant 23 : index
    %239 = memref.load %arg6[%c23] : memref<32xf32, #tpu.memory_space<smem>>
    %240 = vector.broadcast %237 : vector<8x1xf32> to vector<8x128xf32>
    %241 = vector.broadcast %238 : vector<1x128xf32> to vector<8x128xf32>
    %242 = arith.addf %240, %241 : vector<8x128xf32>
    %243 = math.tanh %242 : vector<8x128xf32>
    %244 = vector.broadcast %239 : f32 to vector<8x128xf32>
    %245 = arith.mulf %244, %243 : vector<8x128xf32>
    %246 = arith.addf %236, %245 : vector<8x128xf32>
    %247 = vector.extract_strided_slice %3 {offsets = [0, 24], sizes = [8, 1], strides = [1, 1]} : vector<8x32xf32> to vector<8x1xf32>
    %248 = vector.extract_strided_slice %5 {offsets = [24, 0], sizes = [1, 128], strides = [1, 1]} : vector<32x128xf32> to vector<1x128xf32>
    %c24 = arith.constant 24 : index
    %249 = memref.load %arg6[%c24] : memref<32xf32, #tpu.memory_space<smem>>
    %250 = vector.broadcast %247 : vector<8x1xf32> to vector<8x128xf32>
    %251 = vector.broadcast %248 : vector<1x128xf32> to vector<8x128xf32>
    %252 = arith.addf %250, %251 : vector<8x128xf32>
    %253 = math.tanh %252 : vector<8x128xf32>
    %254 = vector.broadcast %249 : f32 to vector<8x128xf32>
    %255 = arith.mulf %254, %253 : vector<8x128xf32>
    %256 = arith.addf %246, %255 : vector<8x128xf32>
    %257 = vector.extract_strided_slice %3 {offsets = [0, 25], sizes = [8, 1], strides = [1, 1]} : vector<8x32xf32> to vector<8x1xf32>
    %258 = vector.extract_strided_slice %5 {offsets = [25, 0], sizes = [1, 128], strides = [1, 1]} : vector<32x128xf32> to vector<1x128xf32>
    %c25 = arith.constant 25 : index
    %259 = memref.load %arg6[%c25] : memref<32xf32, #tpu.memory_space<smem>>
    %260 = vector.broadcast %257 : vector<8x1xf32> to vector<8x128xf32>
    %261 = vector.broadcast %258 : vector<1x128xf32> to vector<8x128xf32>
    %262 = arith.addf %260, %261 : vector<8x128xf32>
    %263 = math.tanh %262 : vector<8x128xf32>
    %264 = vector.broadcast %259 : f32 to vector<8x128xf32>
    %265 = arith.mulf %264, %263 : vector<8x128xf32>
    %266 = arith.addf %256, %265 : vector<8x128xf32>
    %267 = vector.extract_strided_slice %3 {offsets = [0, 26], sizes = [8, 1], strides = [1, 1]} : vector<8x32xf32> to vector<8x1xf32>
    %268 = vector.extract_strided_slice %5 {offsets = [26, 0], sizes = [1, 128], strides = [1, 1]} : vector<32x128xf32> to vector<1x128xf32>
    %c26 = arith.constant 26 : index
    %269 = memref.load %arg6[%c26] : memref<32xf32, #tpu.memory_space<smem>>
    %270 = vector.broadcast %267 : vector<8x1xf32> to vector<8x128xf32>
    %271 = vector.broadcast %268 : vector<1x128xf32> to vector<8x128xf32>
    %272 = arith.addf %270, %271 : vector<8x128xf32>
    %273 = math.tanh %272 : vector<8x128xf32>
    %274 = vector.broadcast %269 : f32 to vector<8x128xf32>
    %275 = arith.mulf %274, %273 : vector<8x128xf32>
    %276 = arith.addf %266, %275 : vector<8x128xf32>
    %277 = vector.extract_strided_slice %3 {offsets = [0, 27], sizes = [8, 1], strides = [1, 1]} : vector<8x32xf32> to vector<8x1xf32>
    %278 = vector.extract_strided_slice %5 {offsets = [27, 0], sizes = [1, 128], strides = [1, 1]} : vector<32x128xf32> to vector<1x128xf32>
    %c27 = arith.constant 27 : index
    %279 = memref.load %arg6[%c27] : memref<32xf32, #tpu.memory_space<smem>>
    %280 = vector.broadcast %277 : vector<8x1xf32> to vector<8x128xf32>
    %281 = vector.broadcast %278 : vector<1x128xf32> to vector<8x128xf32>
    %282 = arith.addf %280, %281 : vector<8x128xf32>
    %283 = math.tanh %282 : vector<8x128xf32>
    %284 = vector.broadcast %279 : f32 to vector<8x128xf32>
    %285 = arith.mulf %284, %283 : vector<8x128xf32>
    %286 = arith.addf %276, %285 : vector<8x128xf32>
    %287 = vector.extract_strided_slice %3 {offsets = [0, 28], sizes = [8, 1], strides = [1, 1]} : vector<8x32xf32> to vector<8x1xf32>
    %288 = vector.extract_strided_slice %5 {offsets = [28, 0], sizes = [1, 128], strides = [1, 1]} : vector<32x128xf32> to vector<1x128xf32>
    %c28 = arith.constant 28 : index
    %289 = memref.load %arg6[%c28] : memref<32xf32, #tpu.memory_space<smem>>
    %290 = vector.broadcast %287 : vector<8x1xf32> to vector<8x128xf32>
    %291 = vector.broadcast %288 : vector<1x128xf32> to vector<8x128xf32>
    %292 = arith.addf %290, %291 : vector<8x128xf32>
    %293 = math.tanh %292 : vector<8x128xf32>
    %294 = vector.broadcast %289 : f32 to vector<8x128xf32>
    %295 = arith.mulf %294, %293 : vector<8x128xf32>
    %296 = arith.addf %286, %295 : vector<8x128xf32>
    %297 = vector.extract_strided_slice %3 {offsets = [0, 29], sizes = [8, 1], strides = [1, 1]} : vector<8x32xf32> to vector<8x1xf32>
    %298 = vector.extract_strided_slice %5 {offsets = [29, 0], sizes = [1, 128], strides = [1, 1]} : vector<32x128xf32> to vector<1x128xf32>
    %c29 = arith.constant 29 : index
    %299 = memref.load %arg6[%c29] : memref<32xf32, #tpu.memory_space<smem>>
    %300 = vector.broadcast %297 : vector<8x1xf32> to vector<8x128xf32>
    %301 = vector.broadcast %298 : vector<1x128xf32> to vector<8x128xf32>
    %302 = arith.addf %300, %301 : vector<8x128xf32>
    %303 = math.tanh %302 : vector<8x128xf32>
    %304 = vector.broadcast %299 : f32 to vector<8x128xf32>
    %305 = arith.mulf %304, %303 : vector<8x128xf32>
    %306 = arith.addf %296, %305 : vector<8x128xf32>
    %307 = vector.extract_strided_slice %3 {offsets = [0, 30], sizes = [8, 1], strides = [1, 1]} : vector<8x32xf32> to vector<8x1xf32>
    %308 = vector.extract_strided_slice %5 {offsets = [30, 0], sizes = [1, 128], strides = [1, 1]} : vector<32x128xf32> to vector<1x128xf32>
    %c30 = arith.constant 30 : index
    %309 = memref.load %arg6[%c30] : memref<32xf32, #tpu.memory_space<smem>>
    %310 = vector.broadcast %307 : vector<8x1xf32> to vector<8x128xf32>
    %311 = vector.broadcast %308 : vector<1x128xf32> to vector<8x128xf32>
    %312 = arith.addf %310, %311 : vector<8x128xf32>
    %313 = math.tanh %312 : vector<8x128xf32>
    %314 = vector.broadcast %309 : f32 to vector<8x128xf32>
    %315 = arith.mulf %314, %313 : vector<8x128xf32>
    %316 = arith.addf %306, %315 : vector<8x128xf32>
    %317 = vector.extract_strided_slice %3 {offsets = [0, 31], sizes = [8, 1], strides = [1, 1]} : vector<8x32xf32> to vector<8x1xf32>
    %318 = vector.extract_strided_slice %5 {offsets = [31, 0], sizes = [1, 128], strides = [1, 1]} : vector<32x128xf32> to vector<1x128xf32>
    %c31 = arith.constant 31 : index
    %319 = memref.load %arg6[%c31] : memref<32xf32, #tpu.memory_space<smem>>
    %320 = vector.broadcast %317 : vector<8x1xf32> to vector<8x128xf32>
    %321 = vector.broadcast %318 : vector<1x128xf32> to vector<8x128xf32>
    %322 = arith.addf %320, %321 : vector<8x128xf32>
    %323 = math.tanh %322 : vector<8x128xf32>
    %324 = vector.broadcast %319 : f32 to vector<8x128xf32>
    %325 = arith.mulf %324, %323 : vector<8x128xf32>
    %326 = arith.addf %316, %325 : vector<8x128xf32>
    %327 = tpu.iota {dimensions = array<i32: 1>} : vector<8x128xi32>
    %328 = vector.broadcast %1 : i32 to vector<8x128xi32>
    %329 = arith.cmpi slt, %327, %328 : vector<8x128xi32>
    %cst_6 = arith.constant -1.000000e+06 : f32
    %330 = vector.broadcast %cst_6 : f32 to vector<8x128xf32>
    %331 = arith.select %329, %326, %330 : vector<8x128xi1>, vector<8x128xf32>
    %c16_i32 = arith.constant 16 : i32
    %332 = vector.broadcast %c16_i32 : i32 to vector<8x128xi32>
    %333 = arith.cmpi slt, %327, %332 : vector<8x128xi32>
    %cst_7 = arith.constant -1.000000e+30 : f32
    %334 = vector.broadcast %cst_7 : f32 to vector<8x128xf32>
    %335 = arith.select %333, %331, %334 : vector<8x128xi1>, vector<8x128xf32>
    %cst_8 = arith.constant dense<0xFF800000> : vector<8xf32>
    %336 = vector.multi_reduction <maximumf>, %335, %cst_8 [1] : vector<8x128xf32> to vector<8xf32>
    %337 = vector.shape_cast %336 : vector<8xf32> to vector<8x1xf32>
    %338 = vector.broadcast %337 : vector<8x1xf32> to vector<8x128xf32>
    %339 = arith.subf %335, %338 : vector<8x128xf32>
    %340 = math.exp %339 : vector<8x128xf32>
    %cst_9 = arith.constant dense<0.000000e+00> : vector<8xf32>
    %341 = vector.multi_reduction <add>, %340, %cst_9 [1] : vector<8x128xf32> to vector<8xf32>
    %342 = vector.shape_cast %341 : vector<8xf32> to vector<8x1xf32>
    %343 = tpu.reciprocal %342 {approx = true} : vector<8x1xf32> -> vector<8x1xf32>
    %344 = arith.mulf %342, %343 : vector<8x1xf32>
    %cst_10 = arith.constant 2.000000e+00 : f32
    %345 = vector.broadcast %cst_10 : f32 to vector<8x1xf32>
    %346 = arith.subf %345, %344 : vector<8x1xf32>
    %347 = arith.mulf %343, %346 : vector<8x1xf32>
    %348 = vector.broadcast %347 : vector<8x1xf32> to vector<8x128xf32>
    %349 = arith.mulf %340, %348 : vector<8x128xf32>
    %c0_11 = arith.constant 0 : index
    %c0_12 = arith.constant 0 : index
    %c0_13 = arith.constant 0 : index
    %350 = vector.load %arg8[%c0_11, %c0_12, %c0_13] : memref<1x8x128xf32, #tpu.memory_space<vmem>>, vector<1x8x128xf32>
    %351 = vector.shape_cast %350 : vector<1x8x128xf32> to vector<8x128xf32>
    %352 = vector.shape_cast %349 : vector<8x128xf32> to vector<1x8x128xf32>
    tpu.vector_store %arg8[%c0_11, %c0_12, %c0_13], %352 {strides = array<i32>} : memref<1x8x128xf32, #tpu.memory_space<vmem>>, vector<1x8x128xf32>,
    %c0_14 = arith.constant 0 : index
    %c0_15 = arith.constant 0 : index
    %c0_16 = arith.constant 0 : index
    %353 = vector.load %arg5[%c0_14, %c0_15, %c0_16] : memref<1x128x128xf32, #tpu.memory_space<vmem>>, vector<1x128x128xf32>
    %354 = vector.shape_cast %353 : vector<1x128x128xf32> to vector<128x128xf32>
    %cst_17 = arith.constant dense<0.000000e+00> : vector<8x128xf32>
    %355 = tpu.matmul %349, %354, %cst_17 {dimension_numbers = #tpu.dot_dimension_numbers<[1], [0], [0], [1], [0, 0, 1, 1], [], []>} : vector<8x128xf32>, vector<128x128xf32>, vector<8x128xf32> -> vector<8x128xf32>
    %c0_18 = arith.constant 0 : index
    %c0_19 = arith.constant 0 : index
    %c0_20 = arith.constant 0 : index
    %356 = vector.load %arg7[%c0_18, %c0_19, %c0_20] : memref<1x8x128xf32, #tpu.memory_space<vmem>>, vector<1x8x128xf32>
    %357 = vector.shape_cast %356 : vector<1x8x128xf32> to vector<8x128xf32>
    %358 = vector.shape_cast %355 : vector<8x128xf32> to vector<1x8x128xf32>
    tpu.vector_store %arg7[%c0_18, %c0_19, %c0_20], %358 {strides = array<i32>} : memref<1x8x128xf32, #tpu.memory_space<vmem>>, vector<1x8x128xf32>,
    return
  }
  func.func @transform_0(%arg0: i32, %arg1: i32, %arg2: memref<3xi32, #tpu.memory_space<smem>>) -> (i32, i32, i32) {
    %c0_i32 = arith.constant 0 : i32
    %c0_i32_0 = arith.constant 0 : i32
    return %arg0, %arg1, %c0_i32 : i32, i32, i32
  }
  func.func @transform_1(%arg0: i32, %arg1: i32, %arg2: memref<3xi32, #tpu.memory_space<smem>>) -> (i32, i32, i32) {
    %c0_i32 = arith.constant 0 : i32
    %c0_i32_0 = arith.constant 0 : i32
    %c0_i32_1 = arith.constant 0 : i32
    return %arg0, %c0_i32, %c0_i32_0 : i32, i32, i32
  }
  func.func @transform_2(%arg0: i32, %arg1: i32, %arg2: memref<3xi32, #tpu.memory_space<smem>>) -> (i32, i32, i32) {
    %c0_i32 = arith.constant 0 : i32
    %c0_i32_0 = arith.constant 0 : i32
    %c0_i32_1 = arith.constant 0 : i32
    return %arg0, %c0_i32, %c0_i32_0 : i32, i32, i32
  }
  func.func @transform_3(%arg0: i32, %arg1: i32, %arg2: memref<3xi32, #tpu.memory_space<smem>>) -> i32 {
    %c0_i32 = arith.constant 0 : i32
    %c0_i32_0 = arith.constant 0 : i32
    return %c0_i32 : i32
  }
  func.func @transform_4(%arg0: i32, %arg1: i32, %arg2: memref<3xi32, #tpu.memory_space<smem>>) -> (i32, i32, i32) {
    %c0_i32 = arith.constant 0 : i32
    %c0_i32_0 = arith.constant 0 : i32
    return %arg0, %arg1, %c0_i32 : i32, i32, i32
  }
  func.func @transform_5(%arg0: i32, %arg1: i32, %arg2: memref<3xi32, #tpu.memory_space<smem>>) -> (i32, i32, i32) {
    %c0_i32 = arith.constant 0 : i32
    %c0_i32_0 = arith.constant 0 : i32
    return %arg0, %arg1, %c0_i32 : i32, i32, i32
  }
}

</mosaic_0001>

<bundles_post_ra>
// kernel: additive_attention.1
= control target key start
LH: loop header
LB: loop body
LE: loop exit
PB: predicated region body
PF: predicated region fallthrough
CT: control target
= control target key end

     0   :  { %s1318_s24 = smov [#allocation3]   ;;  %s1632_s0 = inlined_call_operand.vmem [shape: s32[3], index: 0, kind: input, shape index: {}]   ;;  %s1633_s1 = inlined_call_operand.vmem [shape: f32[3,8,32], index: 1, kind: input, shape index: {}]   ;;  %s1634_s2 = inlined_call_operand.vmem [shape: f32[3,32,128], index: 2, kind: input, shape index: {}]   ;;  %s1635_s3 = inlined_call_operand.vmem [shape: f32[3,128,128], index: 3, kind: input, shape index: {}]   ;;  %s1636_s4 = inlined_call_operand.vmem [shape: f32[32], index: 4, kind: input, shape index: {}]   ;;  %s1637_s5 = inlined_call_operand.hbm [shape: f32[3,8,128], index: 5, kind: output, shape index: {0}]   ;;  %s1638_s6 = inlined_call_operand.hbm [shape: f32[3,8,128], index: 6, kind: output, shape index: {1}]  }
   0x1   :  { %1639 = sst [smem:[#allocation14_spill]] %s1633_s1  ;;  %s13_s23 = sshll.u32 %s1632_s0, 4  ;;  %s14_s23 = int_to_ptr.vmem [resolvable:$true] %s13_s23 }
   0x2   :  { %16 = dma.vmem_to_smem %s14_s23, 16, %s1318_s24, [#allocation2] }
   0x3   :  { %1280 = dma.done.wait [#allocation2], 16 }
   0x4   :  { %1281 = vsyncadd [#allocation2], 4294967280 }
   0x5   :  { %19 = sfence }
   0x6   :  { %20 = vsyncpa [#allocation6], 0 }
   0x7   :  { %21 = vsyncpa [#allocation5], 0 }
   0x8   :  { %23 = vsyncpa [#allocation5 + $0x1], 0 }
   0x9   :  { %24 = vsyncpa [#allocation9], 0 }
   0xa   :  { %26 = vsyncpa [#allocation9 + $0x1], 0  ;;  %s1390_s25 = smov 0   ;;  %s1392_s26 = smov 0  }
   0xb   :  { %s1394_s27 = smov 0   ;;  %s1396_s28 = smov 0  }
   0xc   :  { %s1398_s0 = smov 0   ;;  %s1400_s29 = smov 0  }
   0xd LB: > { %s915_s30 = sadd.s32 4294967295, %s1316_s29   ;;  %s916_s7 = sadd.s32 4294967294, %s1316_s29   ;;  %s1316_s29 = sphi %s1400_s29, %s32_s29   ;;  %s1312_s0 = sphi %s1398_s0, %s1647_s0   ;;  %s1308_s28 = sphi %s1396_s28, %s1646_s28   ;;  %s1304_s27 = sphi %s1394_s27, %s1645_s27   ;;  %s1300_s26 = sphi %s1392_s26, %s1644_s26   ;;  %s1296_s25 = sphi %s1390_s25, %s1643_s25  }
   0xe   : > { %s44_s8 = sadd.s32 1, %s1312_s0  ;;  %s154_s9 = sadd.s32 1, %s1304_s27 }
   0xf   : > { %p46_p0 = scmp.ge.s32.totalorder %s44_s8, 3  ;;  %p164_p1 = scmp.ne.s32.totalorder %s1304_s27, %s1300_s26 }
  0x10   : > { %p165_p2 = scmp.eq.s32.totalorder %s915_s30, 2  ;;  %p170_p3 = scmp.ne.s32.totalorder %s1300_s26, %s1296_s25 }
  0x11   : > { %s1649_s8 = smov (%p46_p0, %s44_s8), 0  ;;  %p171_p5 = scmp.eq.s32.totalorder %s916_s7, 2 }
  0x12   : > { %p1430_p4 = por %p165_p2, %p164_p1  ;;  %s149_s11 = ssub.s32 %s1312_s0, %s1649_s8 }
  0x13   : > { %p917_p6 = scmp.ge.s32.totalorder %s1316_s29, 1  ;;  %p152_p7 = scmp.eq.s32.totalorder %s149_s11, 0 }
  0x14   : > { %p1437_p8 = por %p171_p5, %p170_p3  ;;  %p206_p9 = scmp.lt.s32.totalorder %s1316_s29, 4 }
  0x15   : > { %s1443_s13 = scalar_select %p152_p7, %s1304_s27, %s154_s9  }
  0x16   : > { %p207_p10 = pnand %p917_p6, %p206_p9  ;;  %p987_p11 = scmp.eq.s32.totalorder %s915_s30, 0 }
  0x17   : > { %s218_s16 = sshll.u32 %s1636_s4, 4  ;;  %s1319_s17 = smov [#allocation4]   ;;  %s219_s16 = int_to_ptr.vmem [resolvable:$true] %s218_s16 }
  0x18   : > { %p976_p12 = pneg %p207_p10  ;;  %257 = sbr.rel (%p207_p10) target bundleno = 665 (0x299), region = 36 }
  0x1a   : > { %p977_p13 = pnand %p987_p11, %p976_p12 }
  0x1c   : > { %979 = dma.vmem_to_smem (!%p977_p13), %s219_s16, 16, %s1319_s17, [#allocation6]  }
  0x1d   : > { %1283 = dma.done.wait (%p987_p11), [#allocation6], 16  }
  0x1e   : > { %1285 = vsyncadd (%p987_p11), [#allocation6], 4294967280 }
  0x1f   : > { %264 = sfence }
  0x20   : > { %p304_p0 = scmp.lt.s32.totalorder %s1308_s28, 2  ;;  %v1320_v0 = vmov 2   ;;  %v1321_v1 = vmov 0   ;;  %v1322_v2 = vmov 4   ;;  %s1642_s1 = sld [smem:[#allocation14_spill]]  ;;  %v1323_v4 = vmov 3  }
  0x21   : > { %1074 = vset.pattern.permute.xlu1 %v1320_v0  ;;  %1072 = vset.pattern.permute.xlu0 %v1321_v1  ;;  %v1324_v5 = vmov 1   ;;  %v1325_v6 = vmov 5   ;;  %v1326_v7 = vmov 6   ;;  %v1327_v8 = vmov 8   ;;  %s327_s9 = sld [smem:[#allocation4]] }
  0x22   : > { %s1450_s18 = scalar_select %p304_p0, %s1308_s28, 2  ;;  %1076 = vset.pattern.permute.xlu2 %v1322_v2  ;;  %v1328_v9 = vmov 7   ;;  %v1329_v10 = vmov 9   ;;  %v1330_v11 = vmov 13   ;;  %v1331_v12 = vmov 10  }
  0x23   : > { %v1332_v13 = vmov 11   ;;  %v1333_v14 = vmov 18   ;;  %v1334_v15 = vmov 12   ;;  %v1335_v16 = vmov 14   ;;  %s929_s11 = sld [smem:[#allocation4 + $0x1]] }
  0x24   : > { %s924_s19 = sshll.u32 %s1450_s18, 3  ;;  %v1336_v17 = vmov 23   ;;  %v1337_v18 = vmov 15   ;;  %v1338_v19 = vmov 16   ;;  %v1339_v20 = vmov 17   ;;  %s966_s23 = sshll.u32 %s1450_s18, 5 }
  0x25   : > { %v1340_v21 = vmov 28   ;;  %v1341_v22 = vmov 19   ;;  %v1342_v23 = vmov 20   ;;  %v1343_v24 = vmov 31   ;;  %s1494_s7 = scalar_lea.vmem %s1634_s2, %s966_s23  ;;  %s930_s14 = sld [smem:[#allocation4 + $0x2]] }
  0x26   : > { %s310_s22 = scalar_lea.vmem %s1642_s1, %s924_s19  ;;  %v1344_v25 = vmov 21   ;;  %v1345_v26 = vmov 22   ;;  %v1346_v27 = vmov 24   ;;  %v1347_v28 = vmov 25   ;;  %v323_v35 = vld [vmem:[%s1494_s7] sm:$0xff]  ;;  %s931_s15 = sld [smem:[#allocation4 + $0x3]] }
  0x27   : > { %v1456_v3 = vld [vmem:[%s310_s22] sm:$0xff]  ;;  %v1348_v29 = vmov 26   ;;  %v1349_v30 = vmov 27   ;;  %v1350_v31 = vmov 29   ;;  %v1351_v32 = vmov 30   ;;  %s932_s16 = sld [smem:[#allocation4 + $0x4]] }
  0x28   : > { %352 = vperm.xlu1 %1074, %v1456_v3   ;;  %330 = vperm.xlu0 %1072, %v1456_v3   ;;  %v333_v38 = vperm.slane %v323_v35, 0  ;;  %v355_v39 = vperm.slane %v323_v35, 2  ;;  %v344_v41 = vperm.slane %v323_v35, 1  ;;  %v366_v44 = vperm.slane %v323_v35, 3  ;;  %s933_s17 = sld [smem:[#allocation4 + $0x5]] }
  0x29   : > { %374 = vperm.xlu2 %1076, %v1456_v3   ;;  %v377_v48 = vperm.slane %v323_v35, 4  ;;  %v336_v51 = vstv %s327_s9  ;;  %v388_v52 = vperm.slane %v323_v35, 5  ;;  %v347_v54 = vstv %s929_s11  ;;  %s934_s19 = sld [smem:[#allocation4 + $0x6]] }
  0x2a   : > { %v399_v62 = vperm.slane %v323_v35, 6  ;;  %s935_s20 = sld [smem:[#allocation4 + $0x7]] }
  0x2b   : > { %v358_v60 = vstv %s930_s14  ;;  %s936_s21 = sld [smem:[#allocation4 + $0x8]] }
  0x2c   : > { %s937_s22 = sld [smem:[#allocation4 + $0x9]] }
  0x2d   : > { %s1504_s23 = sld [smem:[#allocation4 + $0xa]] }
  0x2e   : > { %s939_s24 = sld [smem:[#allocation4 + $0xb]] }
  0x2f   : > { %s1508_s30 = sld [smem:[#allocation4 + $0xc]] }
  0x30   : > { %1075 = vset.pattern.permute.xlu1 %v1323_v4  ;;  %1073 = vset.pattern.permute.xlu0 %v1324_v5  ;;  %v410_v5 = vperm.slane %v323_v35, 7  ;;  %s1515_s9 = sld [smem:[#allocation4 + $0xd]] }
  0x31   : > { %363 = vperm.xlu1 %1075, %v1456_v3   ;;  %341 = vperm.xlu0 %1073, %v1456_v3   ;;  %s942_s11 = sld [smem:[#allocation4 + $0xe]] }
  0x32   : > { %1077 = vset.pattern.permute.xlu2 %v1325_v6  ;;  %s1520_s14 = sld [smem:[#allocation4 + $0xf]] }
  0x33   : > { %385 = vperm.xlu2 %1077, %v1456_v3  }
  0x39   : > { %1078 = vset.pattern.permute.xlu1 %v1326_v7  ;;  %1080 = vset.pattern.permute.xlu0 %v1327_v8  ;;  %v1498_v7 = vld [vmem:[%s1494_s7 + $0x8] sm:$0xff] }
  0x3a   : > { %396 = vperm.xlu1 %1078, %v1456_v3   ;;  %418 = vperm.xlu0 %1080, %v1456_v3  }
  0x3b   : > { %1079 = vset.pattern.permute.xlu2 %v1328_v9 }
  0x3c   : > { %407 = vperm.xlu2 %1079, %v1456_v3  }
  0x42   : > { %1081 = vset.pattern.permute.xlu1 %v1329_v10  ;;  %1085 = vset.pattern.permute.xlu0 %v1330_v11  ;;  %v380_v10 = vstv %s932_s16  ;;  %s945_s16 = sld [smem:[#allocation4 + $0x11]] }
  0x43   : > { %429 = vperm.xlu1 %1081, %v1456_v3   ;;  %473 = vperm.xlu0 %1085, %v1456_v3  }
  0x44   : > { %1082 = vset.pattern.permute.xlu2 %v1331_v12  ;;  %v421_v12 = vperm.slane %v1498_v7, 0 }
  0x45   : > { %440 = vperm.xlu2 %1082, %v1456_v3  }
  0x4b   : > { %1083 = vset.pattern.permute.xlu1 %v1332_v13  ;;  %1090 = vset.pattern.permute.xlu0 %v1333_v14 }
  0x4c   : > { %451 = vperm.xlu1 %1083, %v1456_v3   ;;  %528 = vperm.xlu0 %1090, %v1456_v3  }
  0x4d   : > { %1084 = vset.pattern.permute.xlu2 %v1334_v15 }
  0x4e   : > { %462 = vperm.xlu2 %1084, %v1456_v3  }
  0x54   : > { %1086 = vset.pattern.permute.xlu1 %v1335_v16  ;;  %1095 = vset.pattern.permute.xlu0 %v1336_v17 }
  0x55   : > { %484 = vperm.xlu1 %1086, %v1456_v3   ;;  %583 = vperm.xlu0 %1095, %v1456_v3  }
  0x56   : > { %1087 = vset.pattern.permute.xlu2 %v1337_v18  ;;  %v391_v18 = vstv %s933_s17  ;;  %s1527_s17 = sld [smem:[#allocation4 + $0x12]] }
  0x57   : > { %495 = vperm.xlu2 %1087, %v1456_v3  }
  0x5d   : > { %1088 = vset.pattern.permute.xlu1 %v1338_v19  ;;  %1100 = vset.pattern.permute.xlu0 %v1340_v21  ;;  %v432_v19 = vperm.slane %v1498_v7, 1 }
  0x5e   : > { %506 = vperm.xlu1 %1088, %v1456_v3   ;;  %638 = vperm.xlu0 %1100, %v1456_v3  }
  0x5f   : > { %1089 = vset.pattern.permute.xlu2 %v1339_v20 }
  0x60   : > { %517 = vperm.xlu2 %1089, %v1456_v3  }
  0x66   : > { %1091 = vset.pattern.permute.xlu1 %v1341_v22  ;;  %1104 = vset.pattern.permute.xlu0 %v1343_v24 }
  0x67   : > { %539 = vperm.xlu1 %1091, %v1456_v3  }
  0x68   : > { %1092 = vset.pattern.permute.xlu2 %v1342_v23 }
  0x69   : > { %550 = vperm.xlu2 %1092, %v1456_v3  }
  0x6f   : > { %1093 = vset.pattern.permute.xlu1 %v1344_v25  ;;  %v402_v25 = vstv %s934_s19  ;;  %s947_s19 = sld [smem:[#allocation4 + $0x13]] }
  0x70   : > { %561 = vperm.xlu1 %1093, %v1456_v3  }
  0x71   : > { %1094 = vset.pattern.permute.xlu2 %v1345_v26 }
  0x72   : > { %572 = vperm.xlu2 %1094, %v1456_v3  }
  0x78   : > { %1096 = vset.pattern.permute.xlu1 %v1346_v27  ;;  %v443_v27 = vperm.slane %v1498_v7, 2 }
  0x79   : > { %594 = vperm.xlu1 %1096, %v1456_v3  }
  0x7a   : > { %1097 = vset.pattern.permute.xlu2 %v1347_v28  ;;  %v454_v28 = vperm.slane %v1498_v7, 3 }
  0x7b   : > { %605 = vperm.xlu2 %1097, %v1456_v3  }
  0x81   : > { %1098 = vset.pattern.permute.xlu1 %v1348_v29 }
  0x82   : > { %616 = vperm.xlu1 %1098, %v1456_v3  }
  0x83   : > { %1099 = vset.pattern.permute.xlu2 %v1349_v30  ;;  %v375_v33 = vpop.permute.xlu2 %374 }
  0x84   : > { %627 = vperm.xlu2 %1099, %v1456_v3   ;;  %v378_v53 = vadd.f32 %v377_v48, %v375_v33  ;;  %v413_v33 = vstv %s935_s20  ;;  %s1531_s20 = sld [smem:[#allocation4 + $0x14]] }
  0x8a   : > { %1101 = vset.pattern.permute.xlu1 %v1350_v31 }
  0x8b   : > { %649 = vperm.xlu1 %1101, %v1456_v3  }
  0x8c   : > { %1102 = vset.pattern.permute.xlu2 %v1351_v32 }
  0x8d   : > { %660 = vperm.xlu2 %1102, %v1456_v3   ;;  %v386_v34 = vpop.permute.xlu2 %385 }
  0x8e   : > { %v389_v61 = vadd.f32 %v388_v52, %v386_v34 }
  0x93   : > { %1103 = vset.pattern.permute.xlu1 %v1343_v24 }
  0x94   : > { %671 = vperm.xlu1 %1103, %v1456_v3   ;;  %v369_v3 = vstv %s931_s15  ;;  %s944_s15 = sld [smem:[#allocation4 + $0x10]] }
  0x96   : > { %v408_v43 = vpop.permute.xlu2 %407 }
  0x97   : > { %v411_v11 = vadd.f32 %v410_v5, %v408_v43  ;;  %v435_v43 = vstv %s937_s22  ;;  %s950_s22 = sld [smem:[#allocation4 + $0x16]] }
  0x9a   : > { %v353_v36 = vpop.permute.xlu1 %352  ;;  %v331_v37 = vpop.permute.xlu0 %330 }
  0x9b   : > { %v334_v40 = vadd.f32 %v333_v38, %v331_v37  ;;  %v356_v42 = vadd.f32 %v355_v39, %v353_v36  ;;  %v465_v37 = vperm.slane %v1498_v7, 4 }
  0x9d   : > { %1105 = vtanh.f32 %v334_v40 }
  0x9e   : > { %1107 = vtanh.f32 %v356_v42 }
  0x9f   : > { %v441_v58 = vpop.permute.xlu2 %440 }
  0xa0   : > { %v444_v34 = vadd.f32 %v443_v27, %v441_v58 }
  0xa3   : > { %v364_v45 = vpop.permute.xlu1 %363  ;;  %v342_v46 = vpop.permute.xlu0 %341 }
  0xa4   : > { %v345_v47 = vadd.f32 %v344_v41, %v342_v46  ;;  %v367_v49 = vadd.f32 %v366_v44, %v364_v45  ;;  %v1106_v50 = vpop.eup %1105  ;;  %v424_v41 = vstv %s936_s21  ;;  %v476_v45 = vperm.slane %v1498_v7, 5  ;;  %s949_s21 = sld [smem:[#allocation4 + $0x15]] }
  0xa5   : > { %v1108_v55 = vpop.eup %1107  ;;  %v337_v56 = vmul.f32 %v1106_v50, %v336_v51 }
  0xa6   : > { %1109 = vtanh.f32 %v345_v47  ;;  %v359_v0 = vmul.f32 %v1108_v55, %v358_v60 }
  0xa7   : > { %1111 = vtanh.f32 %v367_v49  ;;  %v487_v49 = vperm.slane %v1498_v7, 6 }
  0xa8   : > { %1113 = vtanh.f32 %v378_v53  ;;  %v463_v16 = vpop.permute.xlu2 %462  ;;  %v446_v53 = vstv %s1504_s23  ;;  %s1541_s23 = sld [smem:[#allocation4 + $0x17]] }
  0xa9   : > { %1115 = vtanh.f32 %v389_v61  ;;  %v466_v44 = vadd.f32 %v465_v37, %v463_v16  ;;  %v498_v61 = vperm.slane %v1498_v7, 7  ;;  %v523_v37 = vstv %s945_s16  ;;  %s959_s16 = sld [smem:[#allocation4 + $0x1f]] }
  0xac   : > { %v397_v57 = vpop.permute.xlu1 %396  ;;  %v1110_v59 = vpop.eup %1109 }
  0xad   : > { %v348_v63 = vmul.f32 %v1110_v59, %v347_v54  ;;  %v1112_v2 = vpop.eup %1111  ;;  %v400_v4 = vadd.f32 %v399_v62, %v397_v57  ;;  %v419_v15 = vpop.permute.xlu0 %418  ;;  %v457_v59 = vstv %s939_s24  ;;  %s1544_s24 = sld [smem:[#allocation4 + $0x19]] }
  0xae   : > { %v370_v8 = vmul.f32 %v1112_v2, %v369_v3  ;;  %v1114_v9 = vpop.eup %1113  ;;  %v422_v21 = vadd.f32 %v421_v12, %v419_v15  ;;  %v468_v3 = vstv %s1508_s30  ;;  %v479_v12 = vstv %s1515_s9  ;;  %s954_s30 = sld [smem:[#allocation4 + $0x1a]] }
  0xaf   : > { %v349_v1 = vadd.f32 %v348_v63, %v337_v56  ;;  %1117 = vtanh.f32 %v400_v4  ;;  %v1116_v17 = vpop.eup %1115  ;;  %v381_v20 = vmul.f32 %v1114_v9, %v380_v10  ;;  %v1513_v56 = vld [vmem:[%s1494_s7 + $0x10] sm:$0xff]  ;;  %v490_v15 = vstv %s942_s11  ;;  %s955_s9 = sld [smem:[#allocation4 + $0x1b]] }
  0xb0   : > { %1119 = vtanh.f32 %v411_v11  ;;  %v392_v23 = vmul.f32 %v1116_v17, %v391_v18  ;;  %v520_v9 = vperm.slane %v1513_v56, 1  ;;  %v531_v17 = vperm.slane %v1513_v56, 2  ;;  %s956_s11 = sld [smem:[#allocation4 + $0x1c]] }
  0xb1   : > { %v360_v6 = vadd.f32 %v359_v0, %v349_v1  ;;  %1121 = vtanh.f32 %v422_v21  ;;  %v496_v35 = vpop.permute.xlu2 %495  ;;  %v509_v0 = vperm.slane %v1513_v56, 0  ;;  %v542_v21 = vperm.slane %v1513_v56, 3 }
  0xb2   : > { %v499_v4 = vadd.f32 %v498_v61, %v496_v35  ;;  %v556_v61 = vstv %s1531_s20 }
  0xb3   : > { %v371_v14 = vadd.f32 %v370_v8, %v360_v6 }
  0xb5   : > { %v430_v13 = vpop.permute.xlu1 %429  ;;  %v382_v22 = vadd.f32 %v381_v20, %v371_v14  ;;  %v1118_v24 = vpop.eup %1117 }
  0xb6   : > { %v433_v26 = vadd.f32 %v432_v19, %v430_v13  ;;  %v403_v30 = vmul.f32 %v1118_v24, %v402_v25  ;;  %v1120_v32 = vpop.eup %1119  ;;  %v474_v48 = vpop.permute.xlu0 %473  ;;  %v501_v24 = vstv %s1520_s14  ;;  %s957_s14 = sld [smem:[#allocation4 + $0x1d]] }
  0xb7   : > { %v393_v29 = vadd.f32 %v392_v23, %v382_v22  ;;  %v414_v39 = vmul.f32 %v1120_v32, %v413_v33  ;;  %v1122_v40 = vpop.eup %1121  ;;  %v477_v54 = vadd.f32 %v476_v45, %v474_v48 }
  0xb8   : > { %1123 = vtanh.f32 %v433_v26  ;;  %v425_v47 = vmul.f32 %v1122_v40, %v424_v41  ;;  %v575_v41 = vperm.slane %v1513_v56, 6 }
  0xb9   : > { %v404_v38 = vadd.f32 %v403_v30, %v393_v29  ;;  %1125 = vtanh.f32 %v444_v34  ;;  %v512_v29 = vstv %s944_s15  ;;  %s958_s15 = sld [smem:[#allocation4 + $0x1e]] }
  0xba   : > { %v518_v57 = vpop.permute.xlu2 %517 }
  0xbb   : > { %v415_v46 = vadd.f32 %v414_v39, %v404_v38  ;;  %v521_v16 = vadd.f32 %v520_v9, %v518_v57  ;;  %v564_v39 = vperm.slane %v1513_v56, 5  ;;  %v578_v9 = vstv %s950_s22 }
  0xbd   : > { %v426_v55 = vadd.f32 %v425_v47, %v415_v46  ;;  %v534_v46 = vstv %s1527_s17  ;;  %s321_s17 = sld [smem:[#allocation3 + %s1308_s28]] }
  0xbe   : > { %v452_v31 = vpop.permute.xlu1 %451  ;;  %v1124_v42 = vpop.eup %1123 }
  0xbf   : > { %v455_v36 = vadd.f32 %v454_v28, %v452_v31  ;;  %v436_v51 = vmul.f32 %v1124_v42, %v435_v43  ;;  %v1126_v52 = vpop.eup %1125  ;;  %v529_v20 = vpop.permute.xlu0 %528  ;;  %v553_v31 = vperm.slane %v1513_v56, 4 }
  0xc0   : > { %v447_v63 = vmul.f32 %v1126_v52, %v446_v53  ;;  %v532_v25 = vadd.f32 %v531_v17, %v529_v20  ;;  %v1537_v52 = vld [vmem:[%s1494_s7 + $0x18] sm:$0xff]  ;;  %s952_s7 = sld [smem:[#allocation4 + $0x18]]  ;;  %v589_v17 = vstv %s1541_s23 }
  0xc1   : > { %1127 = vtanh.f32 %v455_v36  ;;  %v437_v62 = vadd.f32 %v436_v51, %v426_v55  ;;  %v586_v51 = vperm.slane %v1513_v56, 7 }
  0xc2   : > { %1129 = vtanh.f32 %v466_v44 }
  0xc3   : > { %1131 = vtanh.f32 %v477_v54  ;;  %v448_v5 = vadd.f32 %v447_v63, %v437_v62  ;;  %v551_v13 = vpop.permute.xlu2 %550 }
  0xc4   : > { %v554_v38 = vadd.f32 %v553_v31, %v551_v13 }
  0xc6   : > { %v600_v20 = vstv %s952_s7  ;;  %s962_s7 = sshll.u32 %s1308_s28, 3 }
  0xc7   : > { %v485_v50 = vpop.permute.xlu1 %484  ;;  %v1128_v58 = vpop.eup %1127 }
  0xc8   : > { %v488_v60 = vadd.f32 %v487_v49, %v485_v50  ;;  %v458_v1 = vmul.f32 %v1128_v58, %v457_v59  ;;  %v1130_v2 = vpop.eup %1129  ;;  %v545_v49 = vstv %s947_s19  ;;  %v584_v55 = vpop.permute.xlu0 %583  ;;  %v597_v58 = vperm.slane %v1537_v52, 0  ;;  %s967_s19 = sshll.u32 %s1450_s18, 7  ;;  %s1578_s18 = sand.u32 1, %s1300_s26  }
  0xc9   : > { %v469_v10 = vmul.f32 %v1130_v2, %v468_v3  ;;  %v1132_v11 = vpop.eup %1131  ;;  %v587_v62 = vadd.f32 %v586_v51, %v584_v55  ;;  %v608_v2 = vperm.slane %v1537_v52, 1  ;;  %v655_v51 = vstv %s957_s14  ;;  %s1559_s22 = scalar_lea.vmem %s1635_s3, %s967_s19  ;;  %s922_s23 = sshll.u32 %s1578_s18, 3 }
  0xca   : > { %1133 = vtanh.f32 %v488_v60  ;;  %v459_v7 = vadd.f32 %v458_v1, %v448_v5  ;;  %v480_v19 = vmul.f32 %v1132_v11, %v479_v12  ;;  %v567_v1 = vstv %s949_s21  ;;  %s1220_s21 = scalar_lea.hbm %s1638_s6, 24 }
  0xcb   : > { %1135 = vtanh.f32 %v499_v4  ;;  %v619_v11 = vperm.slane %v1537_v52, 2  ;;  %v630_v12 = vperm.slane %v1537_v52, 3 }
  0xcc   : > { %v470_v18 = vadd.f32 %v469_v10, %v459_v7  ;;  %v573_v35 = vpop.permute.xlu2 %572 }
  0xcd   : > { %v576_v50 = vadd.f32 %v575_v41, %v573_v35 }
  0xce   : > { %v481_v27 = vadd.f32 %v480_v19, %v470_v18 }
  0xd0   : > { %v507_v6 = vpop.permute.xlu1 %506  ;;  %v1134_v14 = vpop.eup %1133 }
  0xd1   : > { %v510_v8 = vadd.f32 %v509_v0, %v507_v6  ;;  %v491_v22 = vmul.f32 %v1134_v14, %v490_v15  ;;  %v1136_v23 = vpop.eup %1135 }
  0xd2   : > { %v502_v33 = vmul.f32 %v1136_v23, %v501_v24  ;;  %v641_v23 = vperm.slane %v1537_v52, 4 }
  0xd3   : > { %1137 = vtanh.f32 %v510_v8  ;;  %v492_v32 = vadd.f32 %v491_v22, %v481_v27 }
  0xd4   : > { %1139 = vtanh.f32 %v521_v16 }
  0xd5   : > { %1141 = vtanh.f32 %v532_v25  ;;  %v503_v40 = vadd.f32 %v502_v33, %v492_v32  ;;  %v606_v59 = vpop.permute.xlu2 %605  ;;  %v652_v32 = vperm.slane %v1537_v52, 5  ;;  %v622_v33 = vstv %s954_s30 }
  0xd6   : > { %v609_v7 = vadd.f32 %v608_v2, %v606_v59 }
  0xd9   : > { %v540_v26 = vpop.permute.xlu1 %539  ;;  %v1138_v28 = vpop.eup %1137 }
  0xda   : > { %v543_v30 = vadd.f32 %v542_v21, %v540_v26  ;;  %v513_v34 = vmul.f32 %v1138_v28, %v512_v29  ;;  %v1140_v36 = vpop.eup %1139  ;;  %v639_v26 = vpop.permute.xlu0 %638  ;;  %v611_v29 = vstv %s1544_s24 }
  0xdb   : > { %v524_v43 = vmul.f32 %v1140_v36, %v523_v37  ;;  %v1142_v45 = vpop.eup %1141 }
  0xdc   : > { %1143 = vtanh.f32 %v543_v30  ;;  %v514_v42 = vadd.f32 %v513_v34, %v503_v40  ;;  %v535_v54 = vmul.f32 %v1142_v45, %v534_v46  ;;  %v642_v30 = vadd.f32 %v641_v23, %v639_v26  ;;  %v705_v23 = vld [vmem:[%s1559_s22 + $0x28] sm:$0xff]  ;;  %v702_v26 = vld [vmem:[%s1559_s22 + $0x10] sm:$0xff] }
  0xdd   : > { %1145 = vtanh.f32 %v554_v38  ;;  %v663_v34 = vperm.slane %v1537_v52, 6 }
  0xde   : > { %v525_v53 = vadd.f32 %v524_v43, %v514_v42  ;;  %v628_v15 = vpop.permute.xlu2 %627  ;;  %v633_v43 = vstv %s955_s9  ;;  %s769_s9 = scalar_lea.hbm %s1638_s6, %s962_s7 }
  0xdf   : > { %v631_v22 = vadd.f32 %v630_v12, %v628_v15  ;;  %v712_v12 = vld [vmem:[%s1559_s22 + $0x60] sm:$0xff]  ;;  %v709_v15 = vld [vmem:[%s1559_s22 + $0x48] sm:$0xff] }
  0xe0   : > { %v536_v63 = vadd.f32 %v535_v54, %v525_v53 }
  0xe2   : > { %v562_v44 = vpop.permute.xlu1 %561  ;;  %v1144_v48 = vpop.eup %1143 }
  0xe3   : > { %v565_v47 = vadd.f32 %v564_v39, %v562_v44  ;;  %v546_v57 = vmul.f32 %v1144_v48, %v545_v49  ;;  %v1146_v60 = vpop.eup %1145  ;;  %v644_v49 = vstv %s956_s11  ;;  %s303_s11 = scalar_lea.vmem [#allocation8], %s922_s23 }
  0xe4   : > { %v557_v4 = vmul.f32 %v1146_v60, %v556_v61  ;;  %v666_v61 = vstv %s958_s15  ;;  %s771_s14 = sshll.u32 %s303_s11, 4  ;;  %s773_s15 = sshll.u32 %s769_s9, 4  ;;  %s772_s14 = int_to_ptr.vmem [resolvable:$true] %s771_s14  ;;  %s774_s15 = int_to_ptr.hbm [resolvable:$true] %s773_s15 }
  0xe5   : > { %1147 = vtanh.f32 %v565_v47  ;;  %v547_v3 = vadd.f32 %v546_v57, %v536_v63 }
  0xe6   : > { %1149 = vtanh.f32 %v576_v50  ;;  %v674_v50 = vperm.slane %v1537_v52, 7  ;;  %v682_v52 = vstv %s321_s17  ;;  %s1214_s17 = sshra.s32 %s774_s15, 4  ;;  %s1215_s17 = int_to_ptr.hbm [resolvable:$true] %s1214_s17 }
  0xe7   : > { %1151 = vtanh.f32 %v587_v62  ;;  %v558_v10 = vadd.f32 %v557_v4, %v547_v3  ;;  %v661_v37 = vpop.permute.xlu2 %660  ;;  %v680_v62 = vlaneseq  ;;  %s1216_s19 = scalar_lea.hbm %s1215_s17, 8  ;;  %p1221_p5 = scmp.lt.s32.totalorder %s1215_s17, %s1638_s6 }
  0xe8   : > { %v664_v44 = vadd.f32 %v663_v34, %v661_v37  ;;  %p1217_p1 = scmp.ne.s32.totalorder %s1215_s17, %s1216_s19  ;;  %p1222_p6 = scmp.lt.s32.totalorder %s1220_s21, %s1216_s19 }
  0xe9   : > { %v681_v2 = vand.u32 127, %v680_v62 }
  0xea   : > { %p1218_p2 = pnand %p1217_p1, %p1430_p4  ;;  %p1223_p7 = por %p1222_p6, %p1221_p5 }
  0xeb   : > { %v1148_v0 = vpop.eup %1147  ;;  %v595_v56 = vpop.permute.xlu1 %594  ;;  %vm683_vm0 = vcmp.lt.s32.totalorder %v681_v2, %v682_v52  ;;  %vm685_vm1 = vcmp.lt.s32.totalorder %v681_v2, 16 }
  0xec   : > { %v598_v5 = vadd.f32 %v597_v58, %v595_v56  ;;  %v568_v6 = vmul.f32 %v1148_v0, %v567_v1  ;;  %v1150_v8 = vpop.eup %1149  ;;  %v677_v56 = vstv %s959_s16  ;;  %s743_s16 = scalar_lea.sflag [#allocation9], %s1578_s18  ;;  %p1219_p3 = pneg %p1218_p2 }
  0xed   : > { %v579_v14 = vmul.f32 %v1150_v8, %v578_v9  ;;  %v1152_v16 = vpop.eup %1151 }
  0xee   : > { %1153 = vtanh.f32 %v598_v5  ;;  %v569_v13 = vadd.f32 %v568_v6, %v558_v10  ;;  %v590_v25 = vmul.f32 %v1152_v16, %v589_v17  ;;  %v714_v10 = vld [vmem:[%s1559_s22 + $0x70] sm:$0xff]  ;;  %v708_v16 = vld [vmem:[%s1559_s22 + $0x40] sm:$0xff]  ;;  %p1224_p9 = pnand %p1223_p7, %p1219_p3 }
  0xef   : > { %1155 = vtanh.f32 %v609_v7  ;;  %v715_v7 = vld [vmem:[%s1559_s22 + $0x78] sm:$0xff] }
  0xf0   : > { %v580_v24 = vadd.f32 %v579_v14, %v569_v13  ;;  %716 = vmatpush.msra.mxu0 %v715_v7  ;;  %v711_v13 = vld [vmem:[%s1559_s22 + $0x58] sm:$0xff]  ;;  %v710_v14 = vld [vmem:[%s1559_s22 + $0x50] sm:$0xff] }
  0xf2   : > { %v591_v31 = vadd.f32 %v590_v25, %v580_v24  ;;  %717 = vmatpush.msra.mxu0 %v714_v10  ;;  %v704_v24 = vld [vmem:[%s1559_s22 + $0x20] sm:$0xff]  ;;  %v703_v25 = vld [vmem:[%s1559_s22 + $0x18] sm:$0xff] }
  0xf4   : > { %v617_v18 = vpop.permute.xlu1 %616  ;;  %v1154_v19 = vpop.eup %1153 }
  0xf5   : > { %v620_v21 = vadd.f32 %v619_v11, %v617_v18  ;;  %v601_v27 = vmul.f32 %v1154_v19, %v600_v20  ;;  %v1156_v28 = vpop.eup %1155  ;;  %v713_v11 = vld [vmem:[%s1559_s22 + $0x68] sm:$0xff] }
  0xf6   : > { %v612_v36 = vmul.f32 %v1156_v28, %v611_v29  ;;  %718 = vmatpush.msra.mxu0 %v713_v11  ;;  %v700_v28 = vld [vmem:[%s1559_s22] sm:$0xff] }
  0xf7   : > { %1157 = vtanh.f32 %v620_v21  ;;  %v602_v35 = vadd.f32 %v601_v27, %v591_v31  ;;  %v707_v21 = vld [vmem:[%s1559_s22 + $0x38] sm:$0xff]  ;;  %v701_v27 = vld [vmem:[%s1559_s22 + $0x8] sm:$0xff] }
  0xf8   : > { %1159 = vtanh.f32 %v631_v22  ;;  %719 = vmatpush.msra.mxu0 %v712_v12  ;;  %v706_v22 = vld [vmem:[%s1559_s22 + $0x30] sm:$0xff] }
  0xf9   : > { %1161 = vtanh.f32 %v642_v30  ;;  %v613_v45 = vadd.f32 %v612_v36, %v602_v35 }
  0xfa   : > { %720 = vmatpush.msra.mxu0 %v711_v13 }
  0xfc   : > { %721 = vmatpush.msra.mxu0 %v710_v14 }
  0xfd   : > { %v1158_v38 = vpop.eup %1157  ;;  %v650_v39 = vpop.permute.xlu1 %649 }
  0xfe   : > { %v623_v40 = vmul.f32 %v1158_v38, %v622_v33  ;;  %v653_v41 = vadd.f32 %v652_v32, %v650_v39  ;;  %v1160_v42 = vpop.eup %1159  ;;  %722 = vmatpush.msra.mxu0 %v709_v15 }
  0xff   : > { %v634_v47 = vmul.f32 %v1160_v42, %v633_v43  ;;  %v1162_v48 = vpop.eup %1161 }
 0x100   : > { %1163 = vtanh.f32 %v653_v41  ;;  %v624_v46 = vadd.f32 %v623_v40, %v613_v45  ;;  %v645_v55 = vmul.f32 %v1162_v48, %v644_v49  ;;  %723 = vmatpush.msra.mxu0 %v708_v16 }
 0x101   : > { %1165 = vtanh.f32 %v664_v44 }
 0x102   : > { %v635_v54 = vadd.f32 %v634_v47, %v624_v46  ;;  %724 = vmatpush.msra.mxu0 %v707_v21 }
 0x104   : > { %v646_v63 = vadd.f32 %v645_v55, %v635_v54  ;;  %725 = vmatpush.msra.mxu0 %v706_v22 }
 0x106   : > { %v1164_v53 = vpop.eup %1163  ;;  %v672_v57 = vpop.permute.xlu1 %671  ;;  %726 = vmatpush.msra.mxu0 %v705_v23 }
 0x107   : > { %v675_v58 = vadd.f32 %v674_v50, %v672_v57  ;;  %v656_v59 = vmul.f32 %v1164_v53, %v655_v51  ;;  %v1166_v60 = vpop.eup %1165 }
 0x108   : > { %v667_v1 = vmul.f32 %v1166_v60, %v666_v61  ;;  %727 = vmatpush.msra.mxu0 %v704_v24 }
 0x109   : > { %1167 = vtanh.f32 %v675_v58  ;;  %v657_v0 = vadd.f32 %v656_v59, %v646_v63 }
 0x10a   : > { %728 = vmatpush.msra.mxu0 %v703_v25 }
 0x10b   : > { %v668_v4 = vadd.f32 %v667_v1, %v657_v0 }
 0x10c   : > { %729 = vmatpush.msra.mxu0 %v702_v26 }
 0x10e   : > { %730 = vmatpush.msra.mxu0 %v701_v27 }
 0x10f   : > { %v1168_v3 = vpop.eup %1167 }
 0x110   : > { %v678_v5 = vmul.f32 %v1168_v3, %v677_v56  ;;  %731 = vmatpush.msra.mxu0 %v700_v28 }
 0x112   : > { %v679_v6 = vadd.f32 %v678_v5, %v668_v4 }
 0x114   : > { %v684_v8 = vsel %vm683_vm0, %v679_v6, -1000000.0 }
 0x115   : > { %v686_v9 = vsel %vm685_vm1, %v684_v8, -1e+30 }
 0x116   : > { %687 = vmax.xlane.f32.xlu2 %v686_v9 }
 0x189   : > { %v688_v17 = vpop.xlane.xlu2 %687 }
 0x18a   : > { %v689_v18 = vsub.f32 %v686_v9, %v688_v17 }
 0x18c   : > { %v690_v19 = vmul.f32 1.442695, %v689_v18 }
 0x18e   : > { %1169 = vpow2.f32 %v690_v19 }
 0x194   : > { %v1170_v20 = vpop.eup %1169 }
 0x195   : > { %692 = vadd.xlane.f32.xlu0 %v1170_v20 }
 0x208   : > { %v693_v29 = vpop.xlane.xlu0 %692 }
 0x209   : > { %1171 = vrcp.f32 %v693_v29 }
 0x20f   : > { %v1172_v30 = vpop.eup %1171 }
 0x210   : > { %v695_v31 = vmul.f32 %v1172_v30, %v693_v29 }
 0x212   : > { %v696_v32 = vsub.f32 2.0, %v695_v31 }
 0x214   : > { %v697_v33 = vmul.f32 %v1172_v30, %v696_v32 }
 0x216   : > { %v698_v34 = vmul.f32 %v1170_v20, %v697_v33 }
 0x218   : > { %732 = vmatmul.f32.vlgmr.msra.gmra.mxu0 %v698_v34  ;;  %699 = vst [vmem:[%s303_s11] sm:$0xff] %v698_v34 }
 0x219   : > { %1227 = shalt.err (!%p1224_p9)
}
 0x21a   : > { %973 = dma.vmem_to_hbm [thread:$0]  (%p1430_p4), %s772_s14, 128, %s774_s15, %s743_s16  }
 0x21b   : > { %s754_s11 = scalar_lea.hbm %s1637_s5, %s962_s7  ;;  %s296_s1 = scalar_lea.vmem [#allocation7], %s922_s23 }
 0x21c   : > { %s756_s28 = sshll.u32 %s296_s1, 4  ;;  %s758_s20 = sshll.u32 %s754_s11, 4  ;;  %s757_s28 = int_to_ptr.vmem [resolvable:$true] %s756_s28  ;;  %s759_s20 = int_to_ptr.hbm [resolvable:$true] %s758_s20 }
 0x21d   : > { %s738_s17 = scalar_lea.sflag [#allocation5], %s1578_s18  ;;  %s1242_s19 = sshra.s32 %s759_s20, 4  ;;  %s1243_s19 = int_to_ptr.hbm [resolvable:$true] %s1242_s19 }
 0x21e   : > { %s1244_s21 = scalar_lea.hbm %s1243_s19, 8  ;;  %s1248_s16 = scalar_lea.hbm %s1637_s5, 24 }
 0x21f   : > { %p1245_p10 = scmp.ne.s32.totalorder %s1243_s19, %s1244_s21  ;;  %p1249_p13 = scmp.lt.s32.totalorder %s1243_s19, %s1637_s5 }
 0x220   : > { %p1250_p0 = scmp.lt.s32.totalorder %s1248_s16, %s1244_s21 }
 0x221   : > { %p1246_p11 = pnand %p1245_p10, %p1430_p4 }
 0x222   : > { %p1251_p1 = por %p1250_p0, %p1249_p13 }
 0x223   : > { %p1247_p12 = pneg %p1246_p11 }
 0x225   : > { %p1252_p2 = pnand %p1251_p1, %p1247_p12 }
 0x295   : > { %v733_v35 = vpop.f32.mrf.mxu0 }
 0x296   : > { %736 = vst [vmem:[%s296_s1] sm:$0xff] %v733_v35 }
 0x297   : > { %1255 = shalt.err (!%p1252_p2)
}
 0x298   : > { %972 = dma.vmem_to_hbm [thread:$0]  (%p1430_p4), %s757_s28, 128, %s759_s20, %s738_s17  }
 0x299 PF: > { %p989_p3 = scmp.ge.s32.totalorder %s1316_s29, 2  ;;  %s785_s1 = sand.u32 1, %s1296_s25  }
 0x29a   : > { %s786_s18 = scalar_lea.sflag [#allocation5], %s785_s1 }
 0x29b   : > { %p981_p5 = pnand %p989_p3, %p1437_p8 }
 0x29d   : > { %p982_p6 = pneg %p981_p5 }
 0x29f   : > { %1287 = dma.done.wait (%p982_p6), %s786_s18, 128  }
 0x2a0   : > { %1289 = vsyncadd (%p982_p6), %s786_s18, 4294967168  ;;  %s796_s22 = scalar_lea.sflag [#allocation9], %s785_s1 }
 0x2a1   : > { %1291 = dma.done.wait (%p982_p6), %s796_s22, 128  }
 0x2a2   : > { %1293 = vsyncadd (%p982_p6), %s796_s22, 4294967168  ;;  %s32_s29 = sadd.s32 1, %s1316_s29   ;;  %s1643_s25 = smov %s1300_s26 }
 0x2a3   : > { %p29_p7 = scmp.ge.s32.totalorder %s32_s29, 5   ;;  %s1644_s26 = smov %s1304_s27 }
 0x2a4   : > { %s1645_s27 = smov %s1443_s13  ;;  %s1646_s28 = smov %s1312_s0 }
 0x2a5   : > { %s1647_s0 = smov %s1649_s8  ;;  %31 = sbr.rel (!%p29_p7) target bundleno = 13 (0xd), region = 99 }
 0x2aa   :  { %802 = vsyncpa [#allocation5], 1 }
 0x2ab   :  { %804 = vsyncpa [#allocation5 + $0x1], 1 }
 0x2ac   :  { %805 = vsyncpa [#allocation9], 1 }
 0x2ad   :  { %807 = vsyncpa [#allocation9 + $0x1], 1 }
 0x2ae   :  { %808 = vsyncpa [#allocation6], 1 }
 0x2af   :  { %810 = vsyncpa [#allocation6 + $0x1], 1 }

</bundles_post_ra>
